<compile_context>
chip_gen: v6e
topology: v6e:2x2x1
jax: 0.10.0
libtpu: 0.0.40
codegen_flags: <defaults>
</compile_context>

<pallas_src>
import functools

import numpy as np
import jax
import jax.numpy as jnp
from jax.experimental import pallas as pl
from jax.experimental.pallas import tpu as pltpu

_MASK_MIN = -1e30  # finite stand-in for -inf: exp() underflows to exactly 0


# ---------------------------------------------------------------------------
# In-kernel helpers
# ---------------------------------------------------------------------------
def _layernorm(x, g, b, eps=1e-5):
    # Matches torch.nn.LayerNorm: f32 math, biased variance, eps=1e-5.
    xf = x.astype(jnp.float32)
    mu = jnp.mean(xf, axis=-1, keepdims=True)
    var = jnp.mean((xf - mu) ** 2, axis=-1, keepdims=True)
    return (xf - mu) * jax.lax.rsqrt(var + eps) * g.astype(jnp.float32) + b.astype(jnp.float32)


# ---------------------------------------------------------------------------
# Kernel 1: LN1 + fused QKV projection  ->  lane-dense (TQ, 3D) tile
# ---------------------------------------------------------------------------
def _qkv_kernel(x_ref, ln1g_ref, ln1b_ref, wqkv_ref, bqkv_ref, o_ref):
    xln = _layernorm(x_ref[...], ln1g_ref[...], ln1b_ref[...]).astype(wqkv_ref.dtype)
    # One wide MXU matmul (N = 3D); scale already folded into Wq/Wk/bq.
    y = (jnp.dot(xln, wqkv_ref[...], preferred_element_type=jnp.float32)
         + bqkv_ref[...].astype(jnp.float32))
    # Maximally lane-dense store (3D lanes), no head split / sub-lane stores here.
    o_ref[...] = y.astype(o_ref.dtype)


# ---------------------------------------------------------------------------
# Kernel 2: flash attention (online softmax over KV tiles, K/V full-T resident)
#           + Wo + residual + LN2 + chunked MLP + residual, fused per q tile.
# ---------------------------------------------------------------------------
def _make_attn_mlp_kernel(*, blk_q, blk_k, mask_kind, mlp_chunk):
    has_mask = (mask_kind == "dense")

    def kernel(*args):
        if has_mask:
            (x_ref, q_ref, k_ref, v_ref, mask_ref,
             wo_ref, bo_ref, ln2g_ref, ln2b_ref,
             w1_ref, b1_ref, w2_ref, b2_ref,
             o_ref, m_sc, l_sc, acc_sc) = args
        else:
            (x_ref, q_ref, k_ref, v_ref,
             wo_ref, bo_ref, ln2g_ref, ln2b_ref,
             w1_ref, b1_ref, w2_ref, b2_ref,
             o_ref, m_sc, l_sc, acc_sc) = args
            mask_ref = None

        qi = pl.program_id(1)
        kv = pl.program_id(2)
        f32 = jnp.float32
        cd = wo_ref.dtype

        @pl.when(kv == 0)
        def _():
            m_sc[...] = jnp.full(m_sc.shape, _MASK_MIN, m_sc.dtype)
            l_sc[...] = jnp.zeros(l_sc.shape, l_sc.dtype)
            acc_sc[...] = jnp.zeros(acc_sc.shape, acc_sc.dtype)

        def update():
            q = q_ref[...]                                       # (H, TQ, dh), pre-scaled
            k0 = pl.multiple_of(kv * blk_k, blk_k)
            k = k_ref[:, pl.ds(k0, blk_k), :]                    # slice of resident (H, T, dh)
            v = v_ref[:, pl.ds(k0, blk_k), :]
            # Batched-head logits: one MXU dot_general, no per-head loop.
            s = jnp.einsum("hqd,hkd->hqk", q, k,
                           preferred_element_type=f32)           # (H, TQ, TK)
            if mask_kind == "dense":
                s = s + mask_ref[...][None, :, :]                # finite, pre-clamped
            elif mask_kind == "causal":
                # Mask generated in-kernel: no (T,T) HBM traffic, cheap VPU iota.
                qpos = qi * blk_q + jax.lax.broadcasted_iota(jnp.int32, (blk_q, blk_k), 0)
                kpos = kv * blk_k + jax.lax.broadcasted_iota(jnp.int32, (blk_q, blk_k), 1)
                s = jnp.where((kpos <= qpos)[None, :, :], s, f32(_MASK_MIN))

            m_prev = m_sc[...]                                   # (H, TQ, 1)
            m_new = jnp.maximum(m_prev, jnp.max(s, axis=-1, keepdims=True))
            alpha = jnp.exp(m_prev - m_new)                      # EUP
            p = jnp.exp(s - m_new)                               # EUP
            l_sc[...] = alpha * l_sc[...] + jnp.sum(p, axis=-1, keepdims=True)
            acc_sc[...] = alpha * acc_sc[...] + jnp.einsum(
                "hqk,hkd->hqd", p.astype(cd), v, preferred_element_type=f32)
            m_sc[...] = m_new

        if mask_kind == "causal":
            # Skip fully-masked KV tiles (k_min > q_max): no QK^T / exp / PV work.
            pl.when(kv * blk_k <= qi * blk_q + (blk_q - 1))(update)
        else:
            update()

        @pl.when(kv == pl.num_programs(2) - 1)
        def _():
            n_head = acc_sc.shape[0]
            # Exact reciprocal for parity (approx adds ~2^-12 relative error that
            # compounds with bf16 operand rounding).
            inv_l = pl.reciprocal(l_sc[...], approx=False)
            wv = acc_sc[...] * inv_l                             # (H, TQ, dh) f32
            # Head merge back to a lane-dense (TQ, D) slab, once per q tile.
            # TODO(synk): replace the concatenate with a single pltpu.einshape /
            # major-dim transpose relayout once that lowering path is verified.
            wv2 = jnp.concatenate([wv[h] for h in range(n_head)], axis=-1).astype(cd)

            attn_out = (jnp.dot(wv2, wo_ref[...], preferred_element_type=f32)
                        + bo_ref[...].astype(f32))
            x1 = x_ref[...].astype(f32) + attn_out

            x2 = _layernorm(x1, ln2g_ref[...], ln2b_ref[...]).astype(cd)
            # MLP tiled over the hidden (4D) dim: live activations bounded to
            # (TQ, mlp_chunk), no (TQ, 4D) f32 slab to spill.
            y = x1 + b2_ref[...].astype(f32)
            m_hidden = w1_ref.shape[1]
            for lo in range(0, m_hidden, mlp_chunk):
                hi = lo + mlp_chunk
                h1 = (jnp.dot(x2, w1_ref[:, lo:hi], preferred_element_type=f32)
                      + b1_ref[:, lo:hi].astype(f32))
                # Exact GELU == torch.nn.GELU() default (approximate=True would move
                # this onto the EUP at a parity cost with the PyTorch module).
                h1 = jax.nn.gelu(h1, approximate=False)
                y = y + jnp.dot(h1.astype(cd), w2_ref[lo:hi, :],
                                preferred_element_type=f32)
            o_ref[...] = y.astype(o_ref.dtype)

    return kernel


# ---------------------------------------------------------------------------
# Wrapper
# ---------------------------------------------------------------------------
def residual_attention_block(x, mask, params, *, n_head, causal=False,
                             compute_dtype=None, q_block=128, kv_block=256,
                             mlp_block=512):
    """x: (B, T, D); mask: (T, T) or None; params: pre-transposed (in, out) weights.

    causal=True generates the standard lower-triangular mask in-kernel (Whisper
    decoder); otherwise a dense mask (if given) is streamed tile-by-tile.
    """
    B, T, D = x.shape
    assert D % n_head == 0
    dh = D // n_head
    M = 4 * D
    cd = compute_dtype if compute_dtype is not None else x.dtype
    itemsize = np.dtype(cd).itemsize
    x_isz = np.dtype(x.dtype).itemsize
    f32 = jnp.float32

    TQ = min(q_block, T)
    TK = min(kv_block, T)
    # TODO(synk): pad T (e.g. Whisper encoder T=1500 -> 1536) instead of asserting.
    assert T % TQ == 0 and T % TK == 0, "T must be divisible by the tile sizes"
    nQ, nKV = T // TQ, T // TK
    # NOTE(v7x): keep B*nQ >= 2 so both TensorCores get work on the parallel axes.

    mlp_chunk = min(mlp_block, M)
    if M % mlp_chunk:
        mlp_chunk = M

    # Fold the dh**-0.25 scale into Wq/Wk/bq (wrapper-side, once); build one fused
    # (D, 3D) QKV weight.  Matmul operands in compute dtype (bf16 feeds the MXU at
    # full rate and halves resident weight VMEM); biases / LN params stay f32.
    scale = float(dh) ** -0.25
    wqkv = jnp.concatenate(
        [params["wq"] * scale, params["wk"] * scale, params["wv"]], axis=1).astype(cd)
    bqkv = jnp.concatenate(
        [params["bq"] * scale, jnp.zeros((1, D), f32), params["bv"]], axis=1).astype(f32)
    wo = params["wo"].astype(cd); bo = params["bo"].astype(f32)
    w1 = params["w1"].astype(cd); b1 = params["b1"].astype(f32)
    w2 = params["w2"].astype(cd); b2 = params["b2"].astype(f32)
    ln1g = params["ln1_g"].astype(f32); ln1b = params["ln1_b"].astype(f32)
    ln2g = params["ln2_g"].astype(f32); ln2b = params["ln2_b"].astype(f32)

    if causal:
        mask_kind = "causal"
    elif mask is not None:
        mask_kind = "dense"
    else:
        mask_kind = "none"

    def const_spec(shape):
        # Constant-index blocks (weights): Mosaic keeps the same buffer across
        # grid steps, so they are fetched once.
        return pl.BlockSpec(shape, lambda *_, s=len(shape): (0,) * s)

    def vmem_limit(resident_bytes):
        # Derive from the actual chip (v5e/v6e: 128 MiB, v7x: 64 MiB) and leave
        # headroom for Mosaic internal scratch instead of a blanket 64 MiB clamp.
        cap = 128 << 20
        try:
            cap = int(pltpu.get_tpu_info().vmem_capacity_bytes)
        except Exception:
            pass
        want = int(resident_bytes) + (16 << 20)
        hi = max(32 << 20, cap - (8 << 20))
        return int(min(max(want, 32 << 20), hi))
        # TODO(synk): on v7x with f32 weights (Wo+W1+W2 ~59 MB at D=1280) this does
        # not fit; stream W1/W2 over the hidden dim or use bf16/fp8 weights there.

    # ------------------------- kernel 1: LN1 + fused QKV -------------------------
    k1_resident = ((3 * D * D + 3 * D) * itemsize + 4 * D * 4
                   + 2 * TQ * D * x_isz + 2 * TQ * 3 * D * itemsize)
    qkv = pl.pallas_call(
        _qkv_kernel,
        out_shape=jax.ShapeDtypeStruct((B, T, 3 * D), cd),
        grid=(B, nQ),
        in_specs=[
            pl.BlockSpec((None, TQ, D), lambda b, i: (b, i, 0)),   # x
            const_spec((1, D)), const_spec((1, D)),                # ln1 gamma / beta
            const_spec((D, 3 * D)), const_spec((1, 3 * D)),        # Wqkv, bqkv
        ],
        out_specs=pl.BlockSpec((None, TQ, 3 * D), lambda b, i: (b, i, 0)),
        compiler_params=pltpu.CompilerParams(
            dimension_semantics=("parallel", "parallel"),
            vmem_limit_bytes=vmem_limit(k1_resident)),
        cost_estimate=pl.CostEstimate(
            flops=6 * B * T * D * D,
            transcendentals=B * T,
            bytes_accessed=(B * T * D * x_isz + 3 * D * D * itemsize
                            + 3 * B * T * D * itemsize)),
    )(x, ln1g, ln1b, wqkv, bqkv)

    # Head split: one XLA relayout pass at the kernel boundary (outside the hot
    # loop).  For dh < 128 this replaces 3*n_head masked sub-lane stores +
    # cross-lane extracts per tile inside the kernel.
    qkv_h = jnp.transpose(qkv.reshape(B, T, 3, n_head, dh), (2, 0, 3, 1, 4))
    q_h, k_h, v_h = qkv_h[0], qkv_h[1], qkv_h[2]        # (B, H, T, dh) each

    # --------------- kernel 2: flash attention + Wo + LN2 + MLP ---------------
    kernel2 = _make_attn_mlp_kernel(blk_q=TQ, blk_k=TK, mask_kind=mask_kind,
                                    mlp_chunk=mlp_chunk)

    in_specs = [
        pl.BlockSpec((None, TQ, D), lambda b, i, j: (b, i, 0)),               # x (residual)
        pl.BlockSpec((None, n_head, TQ, dh), lambda b, i, j: (b, 0, i, 0)),   # q tile
        # K/V resident for the FULL sequence per batch: fetched once per b,
        # not re-streamed per q tile.
        pl.BlockSpec((None, n_head, T, dh), lambda b, i, j: (b, 0, 0, 0)),    # k (full T)
        pl.BlockSpec((None, n_head, T, dh), lambda b, i, j: (b, 0, 0, 0)),    # v (full T)
    ]
    operands = [x, q_h, k_h, v_h]
    if mask_kind == "dense":
        # Clamp -inf to a large finite negative so fully-masked KV tiles cannot
        # produce NaNs in the online softmax (fully masked rows then yield a
        # uniform average of V instead of NaN; documented degeneracy).
        mask_f = jnp.maximum(mask.astype(f32), f32(_MASK_MIN))
        in_specs.append(pl.BlockSpec((TQ, TK), lambda b, i, j: (i, j)))       # mask tile
        operands.append(mask_f)
    in_specs += [
        const_spec((D, D)), const_spec((1, D)),                               # Wo, bo
        const_spec((1, D)), const_spec((1, D)),                               # ln2 gamma / beta
        const_spec((D, M)), const_spec((1, M)),                               # W1, b1
        const_spec((M, D)), const_spec((1, D)),                               # W2, b2
    ]
    operands += [wo, bo, ln2g, ln2b, w1, b1, w2, b2]

    k2_resident = ((D * D + 2 * D * M) * itemsize          # Wo, W1, W2
                   + 2 * 2 * T * D * itemsize               # K, V full-T (double-buffered)
                   + 2 * TQ * D * itemsize                  # q tile
                   + 2 * TQ * D * (x_isz + x_isz)           # x tile + out tile
                   + (2 * TQ * TK * 4 if mask_kind == "dense" else 0)
                   + n_head * TQ * (dh + 2) * 4              # m / l / acc scratch
                   + 2 * TQ * mlp_chunk * 4)                 # live MLP chunk

    out = pl.pallas_call(
        kernel2,
        out_shape=jax.ShapeDtypeStruct((B, T, D), x.dtype),
        grid=(B, nQ, nKV),
        in_specs=in_specs,
        out_specs=pl.BlockSpec((None, TQ, D), lambda b, i, j: (b, i, 0)),
        scratch_shapes=[
            pltpu.VMEM((n_head, TQ, 1), jnp.float32),    # running max
            pltpu.VMEM((n_head, TQ, 1), jnp.float32),    # running denominator
            pltpu.VMEM((n_head, TQ, dh), jnp.float32),   # output accumulator
        ],
        compiler_params=pltpu.CompilerParams(
            dimension_semantics=("parallel", "parallel", "arbitrary"),
            vmem_limit_bytes=vmem_limit(k2_resident)),
        cost_estimate=pl.CostEstimate(
            flops=4 * B * T * T * D + 18 * B * T * D * D,
            transcendentals=B * n_head * T * T + 4 * B * T * D,
            bytes_accessed=(2 * B * T * D * x_isz                 # x in + out
                            + 3 * B * T * D * itemsize            # q/k/v once
                            + (D * D + 2 * D * M) * itemsize      # weights
                            + (T * T * 4 if mask_kind == "dense" else 0))),
    )(*operands)
    return out


# ---------------------------------------------------------------------------
# Pure-JAX reference (for correctness check only)
# ---------------------------------------------------------------------------
def _ref_block(x, mask, p, n_head):
    def ln(z, g, b):
        mu = jnp.mean(z, -1, keepdims=True)
        var = jnp.mean((z - mu) ** 2, -1, keepdims=True)
        return (z - mu) * jax.lax.rsqrt(var + 1e-5) * g + b

    B, T, D = x.shape
    dh = D // n_head
    scale = dh ** -0.25

    xln = ln(x, p["ln1_g"][0], p["ln1_b"][0])
    q = (xln @ p["wq"] + p["bq"][0]) * scale
    k = (xln @ p["wk"]) * scale
    v = xln @ p["wv"] + p["bv"][0]
    qh = q.reshape(B, T, n_head, dh).transpose(0, 2, 1, 3)
    kh = k.reshape(B, T, n_head, dh).transpose(0, 2, 3, 1)
    vh = v.reshape(B, T, n_head, dh).transpose(0, 2, 1, 3)
    qk = qh @ kh + mask[None, None]
    w = jax.nn.softmax(qk, axis=-1)
    wv = (w @ vh).transpose(0, 2, 1, 3).reshape(B, T, D)
    x1 = x + (wv @ p["wo"] + p["bo"][0])
    x2 = ln(x1, p["ln2_g"][0], p["ln2_b"][0])
    h = jax.nn.gelu(x2 @ p["w1"] + p["b1"][0], approximate=False)
    return x1 + (h @ p["w2"] + p["b2"][0])


# ---------------------------------------------------------------------------
# Main
# ---------------------------------------------------------------------------
if __name__ == "__main__":
    B, T, D, H = 2, 8, 32, 4          # n_batch, n_ctx, n_state, n_head
    M = 4 * D

    key = jax.random.PRNGKey(0)
    keys = jax.random.split(key, 12)

    # Linear weights stored pre-transposed as (in, out) so y = x @ W (+ b),
    # equal to torch's x @ W^T.
    s = 0.05
    params = {
        "ln1_g": jnp.ones((1, D), jnp.float32),
        "ln1_b": jnp.zeros((1, D), jnp.float32),
        "wq": s * jax.random.normal(keys[0], (D, D), jnp.float32),
        "bq": s * jax.random.normal(keys[1], (1, D), jnp.float32),
        "wk": s * jax.random.normal(keys[2], (D, D), jnp.float32),
        "wv": s * jax.random.normal(keys[3], (D, D), jnp.float32),
        "bv": s * jax.random.normal(keys[4], (1, D), jnp.float32),
        "wo": s * jax.random.normal(keys[5], (D, D), jnp.float32),
        "bo": s * jax.random.normal(keys[6], (1, D), jnp.float32),
        "ln2_g": jnp.ones((1, D), jnp.float32),
        "ln2_b": jnp.zeros((1, D), jnp.float32),
        "w1": s * jax.random.normal(keys[7], (D, M), jnp.float32),
        "b1": s * jax.random.normal(keys[8], (1, M), jnp.float32),
        "w2": s * jax.random.normal(keys[9], (M, D), jnp.float32),
        "b2": s * jax.random.normal(keys[10], (1, D), jnp.float32),
    }

    x = jax.random.normal(keys[11], (B, T, D), jnp.float32)

    # Causal mask (Whisper decoder style): -inf above the diagonal.
    mask = jnp.triu(jnp.full((T, T), -jnp.inf, jnp.float32), k=1)

    # TODO(synk): cross_attention / kv_cache paths of the PyTorch module are not
    # exercised here (default cross_attention=False, kv_cache=None).

    ref = _ref_block(x, mask, params, H)

    # f32, causal mask generated in-kernel (fast path, no mask HBM traffic).
    out_causal = residual_attention_block(x, None, params, n_head=H, causal=True,
                                          compute_dtype=jnp.float32)
    out_causal = jax.block_until_ready(out_causal)
    assert jnp.allclose(out_causal, ref, atol=1e-3, rtol=1e-3), "f32 causal mismatch"

    # f32, arbitrary dense mask streamed tile-by-tile (parity path).
    out_dense = residual_attention_block(x, mask, params, n_head=H, causal=False,
                                         compute_dtype=jnp.float32)
    out_dense = jax.block_until_ready(out_dense)
    assert jnp.allclose(out_dense, ref, atol=1e-3, rtol=1e-3), "f32 dense-mask mismatch"

    # bf16-operand fast path (MXU-friendly, f32 accumulation), causal.
    out_bf16 = residual_attention_block(x, None, params, n_head=H, causal=True,
                                        compute_dtype=jnp.bfloat16)
    out_bf16 = jax.block_until_ready(out_bf16)
    assert jnp.allclose(out_bf16, ref, atol=6e-2, rtol=6e-2), "bf16 mismatch"

    print("KERNEL_OK")
</pallas_src>

<mosaic_0001>
module attributes {stable_mosaic.version = 11 : i64} {
  func.func @_qkv_kernel(%arg0: i32, %arg1: i32, %arg2: memref<1x8x32xf32, #tpu.memory_space<vmem>>, %arg3: memref<1x32xf32, #tpu.memory_space<vmem>>, %arg4: memref<1x32xf32, #tpu.memory_space<vmem>>, %arg5: memref<32x96xf32, #tpu.memory_space<vmem>>, %arg6: memref<1x96xf32, #tpu.memory_space<vmem>>, %arg7: memref<1x8x96xf32, #tpu.memory_space<vmem>>) attributes {dimension_semantics = [#tpu.dimension_semantics<parallel>, #tpu.dimension_semantics<parallel>], iteration_bounds = array<i64: 2, 1>, scalar_prefetch = 0 : i64, scratch_operands = 0 : i64, tpu.core_type = #tpu.core_type<tc>, window_params = [{transform_indices = @transform_0, window_bounds = array<i64: 1, 8, 32>}, {pipeline_mode = #tpu.pipeline_mode<synchronous>, transform_indices = @transform_1, window_bounds = array<i64: 1, 32>}, {pipeline_mode = #tpu.pipeline_mode<synchronous>, transform_indices = @transform_2, window_bounds = array<i64: 1, 32>}, {pipeline_mode = #tpu.pipeline_mode<synchronous>, transform_indices = @transform_3, window_bounds = array<i64: 32, 96>}, {pipeline_mode = #tpu.pipeline_mode<synchronous>, transform_indices = @transform_4, window_bounds = array<i64: 1, 96>}, {transform_indices = @transform_5, window_bounds = array<i64: 1, 8, 96>}]} {
    %c0 = arith.constant 0 : index
    %c0_0 = arith.constant 0 : index
    %c0_1 = arith.constant 0 : index
    %0 = vector.load %arg2[%c0, %c0_0, %c0_1] : memref<1x8x32xf32, #tpu.memory_space<vmem>>, vector<1x8x32xf32>
    %1 = vector.shape_cast %0 : vector<1x8x32xf32> to vector<8x32xf32>
    %c0_2 = arith.constant 0 : index
    %c0_3 = arith.constant 0 : index
    %2 = vector.load %arg3[%c0_2, %c0_3] : memref<1x32xf32, #tpu.memory_space<vmem>>, vector<1x32xf32>
    %c0_4 = arith.constant 0 : index
    %c0_5 = arith.constant 0 : index
    %3 = vector.load %arg4[%c0_4, %c0_5] : memref<1x32xf32, #tpu.memory_space<vmem>>, vector<1x32xf32>
    %cst = arith.constant dense<0.000000e+00> : vector<8xf32>
    %4 = vector.multi_reduction <add>, %1, %cst [1] : vector<8x32xf32> to vector<8xf32>
    %5 = vector.shape_cast %4 : vector<8xf32> to vector<8x1xf32>
    %cst_6 = arith.constant 3.200000e+01 : f32
    %6 = vector.broadcast %cst_6 : f32 to vector<8x1xf32>
    %7 = arith.divf %5, %6 : vector<8x1xf32>
    %8 = vector.broadcast %7 : vector<8x1xf32> to vector<8x32xf32>
    %9 = arith.subf %1, %8 : vector<8x32xf32>
    %10 = arith.mulf %9, %9 : vector<8x32xf32>
    %cst_7 = arith.constant dense<0.000000e+00> : vector<8xf32>
    %11 = vector.multi_reduction <add>, %10, %cst_7 [1] : vector<8x32xf32> to vector<8xf32>
    %12 = vector.shape_cast %11 : vector<8xf32> to vector<8x1xf32>
    %cst_8 = arith.constant 3.200000e+01 : f32
    %13 = vector.broadcast %cst_8 : f32 to vector<8x1xf32>
    %14 = arith.divf %12, %13 : vector<8x1xf32>
    %15 = vector.broadcast %7 : vector<8x1xf32> to vector<8x32xf32>
    %16 = arith.subf %1, %15 : vector<8x32xf32>
    %cst_9 = arith.constant 9.99999974E-6 : f32
    %17 = vector.broadcast %cst_9 : f32 to vector<8x1xf32>
    %18 = arith.addf %14, %17 : vector<8x1xf32>
    %19 = math.rsqrt %18 : vector<8x1xf32>
    %20 = vector.broadcast %19 : vector<8x1xf32> to vector<8x32xf32>
    %21 = arith.mulf %16, %20 : vector<8x32xf32>
    %22 = vector.broadcast %2 : vector<1x32xf32> to vector<8x32xf32>
    %23 = arith.mulf %21, %22 : vector<8x32xf32>
    %24 = vector.broadcast %3 : vector<1x32xf32> to vector<8x32xf32>
    %25 = arith.addf %23, %24 : vector<8x32xf32>
    %c0_10 = arith.constant 0 : index
    %c0_11 = arith.constant 0 : index
    %26 = vector.load %arg5[%c0_10, %c0_11] : memref<32x96xf32, #tpu.memory_space<vmem>>, vector<32x96xf32>
    %cst_12 = arith.constant dense<0.000000e+00> : vector<8x96xf32>
    %27 = tpu.matmul %25, %26, %cst_12 {dimension_numbers = #tpu.dot_dimension_numbers<[1], [0], [0], [1], [0, 0, 1, 1], [], []>} : vector<8x32xf32>, vector<32x96xf32>, vector<8x96xf32> -> vector<8x96xf32>
    %c0_13 = arith.constant 0 : index
    %c0_14 = arith.constant 0 : index
    %28 = vector.load %arg6[%c0_13, %c0_14] : memref<1x96xf32, #tpu.memory_space<vmem>>, vector<1x96xf32>
    %29 = vector.broadcast %28 : vector<1x96xf32> to vector<8x96xf32>
    %30 = arith.addf %27, %29 : vector<8x96xf32>
    %c0_15 = arith.constant 0 : index
    %c0_16 = arith.constant 0 : index
    %c0_17 = arith.constant 0 : index
    %31 = vector.load %arg7[%c0_15, %c0_16, %c0_17] : memref<1x8x96xf32, #tpu.memory_space<vmem>>, vector<1x8x96xf32>
    %32 = vector.shape_cast %31 : vector<1x8x96xf32> to vector<8x96xf32>
    %33 = vector.shape_cast %30 : vector<8x96xf32> to vector<1x8x96xf32>
    tpu.vector_store %arg7[%c0_15, %c0_16, %c0_17], %33 {strides = array<i32>} : memref<1x8x96xf32, #tpu.memory_space<vmem>>, vector<1x8x96xf32>,
    return
  }
  func.func @transform_0(%arg0: i32, %arg1: i32) -> (i32, i32, i32) {
    %c0_i32 = arith.constant 0 : i32
    %c0_i32_0 = arith.constant 0 : i32
    return %arg0, %arg1, %c0_i32 : i32, i32, i32
  }
  func.func @transform_1(%arg0: i32, %arg1: i32) -> (i32, i32) {
    %c0_i32 = arith.constant 0 : i32
    %c0_i32_0 = arith.constant 0 : i32
    %c0_i32_1 = arith.constant 0 : i32
    return %c0_i32, %c0_i32_0 : i32, i32
  }
  func.func @transform_2(%arg0: i32, %arg1: i32) -> (i32, i32) {
    %c0_i32 = arith.constant 0 : i32
    %c0_i32_0 = arith.constant 0 : i32
    %c0_i32_1 = arith.constant 0 : i32
    return %c0_i32, %c0_i32_0 : i32, i32
  }
  func.func @transform_3(%arg0: i32, %arg1: i32) -> (i32, i32) {
    %c0_i32 = arith.constant 0 : i32
    %c0_i32_0 = arith.constant 0 : i32
    %c0_i32_1 = arith.constant 0 : i32
    return %c0_i32, %c0_i32_0 : i32, i32
  }
  func.func @transform_4(%arg0: i32, %arg1: i32) -> (i32, i32) {
    %c0_i32 = arith.constant 0 : i32
    %c0_i32_0 = arith.constant 0 : i32
    %c0_i32_1 = arith.constant 0 : i32
    return %c0_i32, %c0_i32_0 : i32, i32
  }
  func.func @transform_5(%arg0: i32, %arg1: i32) -> (i32, i32, i32) {
    %c0_i32 = arith.constant 0 : i32
    %c0_i32_0 = arith.constant 0 : i32
    return %arg0, %arg1, %c0_i32 : i32, i32, i32
  }
}

</mosaic_0001>

<bundles_post_ra>
// kernel: tpu_custom_call.1
= control target key start
LH: loop header
LB: loop body
LE: loop exit
PB: predicated region body
PF: predicated region fallthrough
CT: control target
= control target key end

     0   :  { %s975_s0 = inlined_call_operand.hbm [shape: f32[2,8,32], index: 0, kind: input, shape index: {}]   ;;  %s976_s1 = inlined_call_operand.vmem [shape: f32[1,32], index: 1, kind: input, shape index: {}]   ;;  %s977_s2 = inlined_call_operand.vmem [shape: f32[1,32], index: 2, kind: input, shape index: {}]   ;;  %s978_s3 = inlined_call_operand.hbm [shape: f32[32,96], index: 3, kind: input, shape index: {}]   ;;  %s979_s4 = inlined_call_operand.vmem [shape: f32[1,96], index: 4, kind: input, shape index: {}]   ;;  %s980_s5 = inlined_call_operand.hbm [shape: f32[2,8,96], index: 5, kind: output, shape index: {}]  }
   0x1   :  { %983 = sst [smem:[#allocation12_spill]] %s978_s3 }
   0x2   :  { %10 = vsyncpa [#allocation3], 0 }
   0x3   :  { %12 = vsyncpa [#allocation3 + $0x1], 0 }
   0x4   :  { %13 = vsyncpa [#allocation6], 0 }
   0x5   :  { %14 = vsyncpa [#allocation4], 0 }
   0x6   :  { %16 = vsyncpa [#allocation4 + $0x1], 0  ;;  %s786_s18 = smov 0   ;;  %s788_s19 = smov 0  }
   0x7   :  { %s790_s20 = smov 0   ;;  %s792_s21 = smov 0  }
   0x8   :  { %s794_s22 = smov 0   ;;  %s796_s23 = smov 0  }
   0x9 LB: > { %s495_s24 = sadd.s32 4294967295, %s747_s23   ;;  %s496_s25 = sadd.s32 4294967294, %s747_s23   ;;  %s747_s23 = sphi %s796_s23, %s22_s23   ;;  %s743_s22 = sphi %s794_s22, %s1003_s22   ;;  %s739_s21 = sphi %s792_s21, %s1002_s21   ;;  %s735_s20 = sphi %s790_s20, %s1001_s20   ;;  %s731_s19 = sphi %s788_s19, %s1000_s19   ;;  %s727_s18 = sphi %s786_s18, %s999_s18  }
   0xa   : > { %p56_p0 = scmp.ne.s32.totalorder %s731_s19, %s727_s18  ;;  %p820_p1 = scmp.eq.s32.totalorder %s495_s24, 0 }
   0xb   : > { %p824_p2 = scmp.eq.s32.totalorder %s495_s24, 1  ;;  %p172_p3 = scmp.eq.s32.totalorder %s496_s25, 1 }
   0xc   : > { %p830_p4 = por %p820_p1, %p56_p0  ;;  %p497_p5 = scmp.ge.s32.totalorder %s747_s23, 1 }
   0xd   : > { %p835_p6 = por %p172_p3, %p56_p0  ;;  %p179_p7 = scmp.lt.s32.totalorder %s747_s23, 3 }
   0xe   : > { %s986_s28 = scalar_select %p830_p4, 1, 0 }
   0xf   : > { %s987_s29 = scalar_select %p835_p6, 1, 0 }
  0x10   : > { %p840_p8 = pnand %p497_p5, %p179_p7  ;;  %s749_s6 = smov [#allocation5]  }
  0x11   : > { %s197_s7 = sshll.u32 %s749_s6, 4  ;;  %s34_s9 = sadd.s32 1, %s743_s22  ;;  %s198_s7 = int_to_ptr.vmem [resolvable:$true] %s197_s7 }
  0x12   : > { %p538_p9 = pneg %p840_p8  ;;  %s620_s10 = scalar_lea.vmem %s198_s7, 512 }
  0x13   : > { %p621_p13 = scmp.ne.s32.totalorder %s198_s7, %s620_s10  ;;  %p628_p5 = scmp.lt.s32.totalorder %s198_s7, %s198_s7 }
  0x14   : > { %p849_p11 = pnand %p538_p9, %p820_p1  ;;  %p629_p7 = scmp.lt.s32.totalorder %s620_s10, %s620_s10 }
  0x16   : > { %p611_p12 = pneg %p849_p11  ;;  %p630_p6 = por %p629_p7, %p628_p5 }
  0x18   : > { %p623_p0 = pnand %p621_p13, %p611_p12 }
  0x1a   : > { %p624_p3 = pneg %p623_p0 }
  0x1c   : > { %p631_p4 = pnand %p630_p6, %p624_p3 }
  0x1e   : > { %634 = shalt.err (!%p631_p4)
}
  0x1f   : > { %s750_s11 = smov 128   ;;  %s751_s12 = smov 8  }
  0x20   : > { %s990_s3 = sld [smem:[#allocation12_spill]]  ;;  %p36_p6 = scmp.ge.s32.totalorder %s34_s9, 2 }
  0x21   : > { %s43_s15 = sadd.s32 1, %s735_s20  ;;  %p50_p4 = scmp.ne.s32.totalorder %s735_s20, %s731_s19 }
  0x22   : > { %p51_p9 = scmp.eq.s32.totalorder %s747_s23, 0  ;;  %s1005_s9 = smov (%p36_p6, %s34_s9), 0 }
  0x23   : > { %991 = sst [smem:[#allocation11_spill]] %s1005_s9  ;;  %p873_p13 = por %p824_p2, %p50_p4 }
  0x24   : > { %p867_p12 = por %p51_p9, %p50_p4  ;;  %s38_s24 = ssub.s32 %s743_s22, %s1005_s9 }
  0x25   : > { %p551_p0 = scmp.lt.s32.totalorder %s747_s23, 2  ;;  %s214_s25 = sand.u32 1, %s735_s20  }
  0x26   : > { %541 = dma.hbm_to_vmem [thread:$0]  (!%p849_p11), %s990_s3, 512, %s198_s7, [#allocation6], %s750_s11, %s750_s11, %s751_s12  }
  0x27   : > { %p41_p11 = scmp.eq.s32.totalorder %s38_s24, 0  ;;  %s500_s6 = sshll.u32 %s214_s25, 3 }
  0x28   : > { %s501_s8 = sshll.u32 %s743_s22, 7  ;;  %s218_s13 = scalar_lea.vmem [#allocation2], %s500_s6 }
  0x29   : > { %s882_s7 = scalar_select %p41_p11, %s735_s20, %s43_s15  }
  0x2a   : > { %s224_s12 = scalar_lea.hbm %s975_s0, %s501_s8  ;;  %s226_s14 = sshll.u32 %s218_s13, 4  ;;  %s227_s14 = int_to_ptr.vmem [resolvable:$true] %s226_s14 }
  0x2b   : > { %p890_p2 = pnand %p551_p0, %p867_p12  ;;  %s215_s3 = scalar_lea.sflag [#allocation3], %s214_s25 }
  0x2c   : > { %s648_s24 = scalar_lea.vmem %s227_s14, 128  ;;  %s752_s15 = smov [#allocation2]  }
  0x2d   : > { %p637_p3 = pneg %p890_p2  ;;  %p649_p5 = scmp.ne.s32.totalorder %s227_s14, %s648_s24 }
  0x2e   : > { %s653_s9 = sshll.u32 %s752_s15, 4  ;;  %s654_s9 = int_to_ptr.vmem [resolvable:$false] %s653_s9 }
  0x2f   : > { %p651_p7 = pnand %p649_p5, %p637_p3  ;;  %s655_s8 = scalar_lea.vmem %s654_s9, 256 }
  0x30   : > { %p656_p4 = scmp.lt.s32.totalorder %s227_s14, %s654_s9  ;;  %p657_p9 = scmp.lt.s32.totalorder %s655_s8, %s648_s24 }
  0x31   : > { %p652_p6 = pneg %p651_p7 }
  0x32   : > { %p658_p11 = por %p657_p9, %p656_p4 }
  0x34   : > { %p659_p10 = pnand %p658_p11, %p652_p6 }
  0x36   : > { %662 = shalt.err (!%p659_p10)
}
  0x37   : > { %545 = dma.hbm_to_vmem [thread:$0]  (!%p890_p2), %s224_s12, 128, %s227_s14, %s215_s3  }
  0x38   : > { %235 = sbr.rel (%p840_p8) target bundleno = 581 (0x245), region = 40  ;;  %s901_s16 = sand.u32 (!%p840_p8), 1, %s731_s19  }
  0x39   : > { %s503_s25 = sshll.u32 (!%p840_p8), %s901_s16, 3  ;;  %s238_s6 = scalar_lea.sflag (!%p840_p8), [#allocation3], %s901_s16 }
  0x3a   : > { %s241_s9 = scalar_lea.vmem (!%p840_p8), [#allocation2], %s503_s25  ;;  %p995_p12 = scmp.ne.s32.totalorder (!%p840_p8), %s986_s28, 0 }
  0x3d   : > { %714 = dma.done.wait (%p995_p12), %s238_s6, 128  }
  0x3e   : > { %716 = vsyncadd (%p995_p12), %s238_s6, 4294967168 }
  0x3f   : > { %718 = dma.done.wait (%p820_p1), [#allocation6], 512  }
  0x40   : > { %720 = vsyncadd (%p820_p1), [#allocation6], 4294966784  ;;  %vm275_vm0 = vcmask 261120   ;;  %v272_v0 = vld [vmem:[%s241_s9] sm:$0xff]  ;;  %v753_v8 = vmov 0.0   ;;  %vm754_vm1 = vmmov 0  }
  0x41   : > { %v276_v1 = vsel %vm275_vm0, %v272_v0, 0.0  ;;  %v307_v7 = vld [vmem:[#allocation5 + $0x18] sm:$0xff]  ;;  %519 = vmatprep.subr.mxu0 %v753_v8  ;;  %v306_v9 = vld [vmem:[#allocation5 + $0x10] sm:$0xff]  ;;  %527 = vmatprep.mubr.msk.f32.mxu0 %vm754_vm1, %v753_v8  ;;  %v305_v10 = vld [vmem:[#allocation5 + $0x8] sm:$0xff]  ;;  %s511_s12 = sshll.u32 %s739_s21, 7  ;;  %s271_s13 = scalar_lea.vmem [#allocation7], %s503_s25 }
  0x42   : > { %277 = vadd.xlane.f32.xlu0 %v276_v1  ;;  %520 = vmatpush3.msra.mxu0 %v307_v7  ;;  %v304_v11 = vld [vmem:[#allocation5] sm:$0xff]  ;;  %v506_v16 = vld [vmem:[%s976_s1] ss:$0 sm:$0xff]  ;;  %s405_s14 = sshll.u32 %s271_s13, 4  ;;  %vm388_vm2 = vcmask 785408   ;;  %s933_s15 = scalar_lea.hbm %s980_s5, %s511_s12  ;;  %s406_s14 = int_to_ptr.vmem [resolvable:$true] %s405_s14 }
  0x43   : > { %521 = vmatprep.subr.mxu0 %v753_v8  ;;  %v507_v18 = vld [vmem:[%s977_s2] ss:$0 sm:$0xff]  ;;  %s391_s8 = scalar_lea.sflag [#allocation4], %s901_s16  ;;  %s663_s6 = scalar_lea.vmem %s406_s14, 128 }
  0x44   : > { %522 = vmatpush3.msra.mxu0 %v306_v9  ;;  %v508_v21 = vld [vmem:[%s979_s4] ss:$0 sm:$0xff]  ;;  %p664_p1 = scmp.ne.s32.totalorder %s406_s14, %s663_s6  ;;  %s755_s21 = smov [#allocation7]  }
  0x45   : > { %523 = vmatprep.subr.mxu0 %v753_v8  ;;  %s667_s25 = sshll.u32 %s755_s21, 4  ;;  %s668_s25 = int_to_ptr.vmem [resolvable:$false] %s667_s25 }
  0x46   : > { %524 = vmatpush3.msra.mxu0 %v305_v10  ;;  %p665_p8 = pnand %p664_p1, %p873_p13  ;;  %s669_s9 = scalar_lea.vmem %s668_s25, 256 }
  0x47   : > { %525 = vmatprep.subr.mxu0 %v753_v8  ;;  %p670_p0 = scmp.lt.s32.totalorder %s406_s14, %s668_s25  ;;  %p671_p2 = scmp.lt.s32.totalorder %s669_s9, %s663_s6 }
  0x48   : > { %526 = vmatpush3.msra.mxu0 %v304_v11  ;;  %p666_p10 = pneg %p665_p8 }
  0x49   : > { %p672_p3 = por %p671_p2, %p670_p0 }
  0x4b   : > { %p673_p5 = pnand %p672_p3, %p666_p10 }
  0xcb   : > { %v278_v2 = vpop.xlane.xlu0 %277 }
  0xcc   : > { %v280_v3 = vmul.f32 0.03125, %v278_v2 }
  0xce   : > { %v281_v4 = vsub.f32 %v272_v0, %v280_v3 }
  0xd0   : > { %v282_v5 = vmul.f32 %v281_v4, %v281_v4 }
  0xd2   : > { %v283_v6 = vsel %vm275_vm0, %v282_v5, 0.0 }
  0xd3   : > { %284 = vadd.xlane.f32.xlu0 %v283_v6 }
 0x15c   : > { %v285_v12 = vpop.xlane.xlu0 %284 }
 0x15d   : > { %v286_v13 = vmul.f32 0.03125, %v285_v12 }
 0x15f   : > { %v287_v14 = vadd.f32 1e-05, %v286_v13 }
 0x161   : > { %607 = vrsqrt.f32 %v287_v14 }
 0x16e   : > { %v608_v15 = vpop.eup %607 }
 0x16f   : > { %v289_v17 = vmul.f32 %v608_v15, %v281_v4 }
 0x171   : > { %v296_v19 = vmul.f32 %v506_v16, %v289_v17 }
 0x173   : > { %v303_v20 = vadd.f32 %v507_v18, %v296_v19 }
 0x175   : > { %528 = vmatmul.mubr.msk.f32.vlgmr.msra.gmra.mxu0 %vm275_vm0, %v303_v20 }
 0x235   : > { %v384_v22 = vpop.f32.mrf.mxu0 }
 0x236   : > { %v385_v23 = vadd.f32 %v508_v21, %v384_v22 }
 0x237   : > { %v529_v24 = vpop.f32.mrf.mxu0 }
 0x238   : > { %389 = vst.msk [vmem:[%s271_s13] sm:$0xff] %vm388_vm2, %v385_v23 }
 0x239   : > { %676 = shalt.err (!%p673_p5)
}
 0x23a   : > { %s677_s3 = scalar_lea.hbm %s933_s15, 128  ;;  %s681_s28 = scalar_lea.hbm %s980_s5, 256 }
 0x23b   : > { %p678_p7 = scmp.ne.s32.totalorder %s933_s15, %s677_s3  ;;  %p682_p9 = scmp.lt.s32.totalorder %s933_s15, %s980_s5 }
 0x23c   : > { %p683_p11 = scmp.lt.s32.totalorder %s681_s28, %s677_s3 }
 0x23d   : > { %p679_p6 = pnand %p678_p7, %p873_p13 }
 0x23e   : > { %p684_p12 = por %p683_p11, %p682_p9 }
 0x23f   : > { %p680_p4 = pneg %p679_p6 }
 0x241   : > { %p685_p1 = pnand %p684_p12, %p680_p4 }
 0x243   : > { %688 = shalt.err (!%p685_p1)
}
 0x244   : > { %536 = dma.vmem_to_hbm [thread:$0]  (%p873_p13), %s406_s14, 128, %s933_s15, %s391_s8  }
 0x245 PF: > { %s417_s11 = sand.u32 1, %s727_s18   ;;  %p996_p8 = scmp.ne.s32.totalorder %s987_s29, 0 }
 0x246   : > { %p997_p10 = scmp.ge.s32.totalorder %s747_s23, 2  ;;  %s418_s12 = scalar_lea.sflag [#allocation4], %s417_s11 }
 0x248   : > { %p547_p0 = pnand %p997_p10, %p996_p8 }
 0x24a   : > { %p548_p2 = pneg %p547_p0 }
 0x24c   : > { %722 = dma.done.wait (%p548_p2), %s418_s12, 128  }
 0x24d   : > { %724 = vsyncadd (%p548_p2), %s418_s12, 4294967168  ;;  %s22_s23 = sadd.s32 1, %s747_s23   ;;  %s998_s17 = sld [smem:[#allocation11_spill]] }
 0x24e   : > { %p19_p3 = scmp.ge.s32.totalorder %s22_s23, 4   ;;  %s999_s18 = smov %s731_s19 }
 0x24f   : > { %s1000_s19 = smov %s735_s20  ;;  %s1001_s20 = smov %s882_s7 }
 0x250   : > { %s1002_s21 = smov %s743_s22  ;;  %21 = sbr.rel (!%p19_p3) target bundleno = 9 (0x9), region = 89 }
 0x253   : > { %s1003_s22 = smov %s998_s17 }
 0x255   :  { %423 = vsyncpa [#allocation3], 1 }
 0x256   :  { %425 = vsyncpa [#allocation3 + $0x1], 1 }
 0x257   :  { %426 = vsyncpa [#allocation6], 1 }
 0x258   :  { %427 = vsyncpa [#allocation4], 1 }
 0x259   :  { %429 = vsyncpa [#allocation4 + $0x1], 1 }

</bundles_post_ra>
